<compile_context>
chip_gen: v7x
topology: tpu7x:2x2x1
jax: 0.10.0
libtpu: 0.0.40
codegen_flags: <defaults>
</compile_context>

<pallas_src>
import jax
import jax.numpy as jnp
from jax.experimental import pallas as pl
from jax.experimental.pallas import tpu as pltpu

INPUT_DIM = 73
HIDDEN1 = 128
HIDDEN2 = 64
OUTPUT_DIM = 5

K_PAD = 128   # padded input-feature width (lane-aligned)
N_PAD = 128   # padded output width (lane-dense stores)


def florr_kernel(x_ref, w1_ref, b1_ref, w2_ref, b2_ref, w3_ref, b3_ref, o_ref):
    # x: (TB, K_PAD) bf16; weights bf16; biases f32; output f32 (TB, N_PAD).
    x = x_ref[...]
    b1 = b1_ref[...]          # (1, 128) f32, implicit broadcast (no per-step broadcast_to)
    b2 = b2_ref[...]          # (1, 64)  f32
    b3 = b3_ref[...]          # (1, 128) f32

    # Layer 1: (TB,128) @ (128,128) -> f32 acc, bias + ReLU in f32.
    h1 = jnp.dot(x, w1_ref[...], preferred_element_type=jnp.float32)
    h1 = jnp.maximum(h1 + b1, 0.0)

    # Layer 2: (TB,128) @ (128,64).
    h2 = jnp.dot(h1.astype(jnp.bfloat16), w2_ref[...],
                 preferred_element_type=jnp.float32)
    h2 = jnp.maximum(h2 + b2, 0.0)

    # Layer 3: (TB,64) @ (64,128) — only the first OUTPUT_DIM columns are real.
    y = jnp.dot(h2.astype(jnp.bfloat16), w3_ref[...],
                preferred_element_type=jnp.float32)
    y = y + b3

    # cols 0:2 -> tanh(v); cols 2: -> sigmoid(v) = 0.5*(tanh(v/2)+1).
    # One tanh pass over the tile instead of tanh + sigmoid.
    col = jax.lax.broadcasted_iota(jnp.int32, y.shape, 1)
    is_tanh = col < 2
    z = jnp.where(is_tanh, y, 0.5 * y)
    t = jnp.tanh(z)
    y = jnp.where(is_tanh, t, 0.5 * (t + 1.0))

    o_ref[...] = y.astype(o_ref.dtype)


def florr_forward(x, params):
    """x: (B, 73) f32. params: f32 (w1,b1,w2,b2,w3,b3) with w stored (in, out)."""
    w1, b1, w2, b2, w3, b3 = params
    B, K = x.shape
    out_dim = w3.shape[1]

    # Batch tile: >=512 rows amortizes per-step overhead; small batches use a
    # single sublane-aligned tile.
    TB = 512
    if B < TB:
        TB = max(8, ((B + 7) // 8) * 8)
    B_pad = pl.cdiv(B, TB) * TB

    # Zero-pad ragged dims (K: 73->128, N: 5->128, batch -> multiple of TB);
    # cast matmul operands to bf16, keep biases f32.
    x_p = jnp.pad(x, ((0, B_pad - B), (0, K_PAD - K))).astype(jnp.bfloat16)
    w1_p = jnp.pad(w1, ((0, K_PAD - K), (0, 0))).astype(jnp.bfloat16)
    w2_b = w2.astype(jnp.bfloat16)
    w3_p = jnp.pad(w3, ((0, 0), (0, N_PAD - out_dim))).astype(jnp.bfloat16)
    b3_p = jnp.pad(b3, ((0, 0), (0, N_PAD - out_dim)))

    resident = lambda shape: pl.BlockSpec(shape, lambda i: (0, 0))

    out = pl.pallas_call(
        florr_kernel,
        out_shape=jax.ShapeDtypeStruct((B_pad, N_PAD), jnp.float32),
        grid=(B_pad // TB,),
        in_specs=[
            pl.BlockSpec((TB, K_PAD), lambda i: (i, 0)),   # x: batch-tiled
            resident((K_PAD, HIDDEN1)),                    # w1 (VMEM-resident)
            resident((1, HIDDEN1)),                        # b1
            resident((HIDDEN1, HIDDEN2)),                  # w2
            resident((1, HIDDEN2)),                        # b2
            resident((HIDDEN2, N_PAD)),                    # w3 (padded cols)
            resident((1, N_PAD)),                          # b3 (padded cols)
        ],
        out_specs=pl.BlockSpec((TB, N_PAD), lambda i: (i, 0)),
        compiler_params=pltpu.CompilerParams(
            dimension_semantics=("parallel",),             # megacore split on v7x
        ),
    )(x_p, w1_p, b1, w2_b, b2, w3_p, b3_p)

    return out[:B, :out_dim]


def init_params(key, input_dim=INPUT_DIM, output_dim=OUTPUT_DIM):
    # Deterministic synthetic init; shapes match the nn.Linear layers
    # (stored transposed: (in_features, out_features)).
    k1, k2, k3 = jax.random.split(key, 3)
    w1 = jax.random.normal(k1, (input_dim, HIDDEN1), jnp.float32) * 0.05
    b1 = jnp.zeros((1, HIDDEN1), jnp.float32)
    w2 = jax.random.normal(k2, (HIDDEN1, HIDDEN2), jnp.float32) * 0.05
    b2 = jnp.zeros((1, HIDDEN2), jnp.float32)
    w3 = jax.random.normal(k3, (HIDDEN2, output_dim), jnp.float32) * 0.05
    b3 = jnp.zeros((1, output_dim), jnp.float32)
    return (w1, b1, w2, b2, w3, b3)


def reference_forward(x, params):
    # Pure-JAX reference mirroring the kernel's bf16-matmul / f32-accumulate
    # numerics, with the torch column-wise tanh / sigmoid semantics.
    w1, b1, w2, b2, w3, b3 = params
    h1 = jnp.dot(x.astype(jnp.bfloat16), w1.astype(jnp.bfloat16),
                 preferred_element_type=jnp.float32)
    h1 = jnp.maximum(h1 + b1, 0.0)
    h2 = jnp.dot(h1.astype(jnp.bfloat16), w2.astype(jnp.bfloat16),
                 preferred_element_type=jnp.float32)
    h2 = jnp.maximum(h2 + b2, 0.0)
    y = jnp.dot(h2.astype(jnp.bfloat16), w3.astype(jnp.bfloat16),
                preferred_element_type=jnp.float32) + b3
    return jnp.concatenate(
        [jnp.tanh(y[:, 0:2]), jax.nn.sigmoid(y[:, 2:5])], axis=1)


if __name__ == "__main__":
    key = jax.random.PRNGKey(0)
    kx, kp = jax.random.split(key)

    B = 8
    x = jax.random.normal(kx, (B, INPUT_DIM), jnp.float32)
    params = init_params(kp, INPUT_DIM, OUTPUT_DIM)

    out = jax.block_until_ready(florr_forward(x, params))
    ref = reference_forward(x, params)

    assert out.shape == (B, OUTPUT_DIM)
    assert jnp.allclose(out, ref, atol=5e-4, rtol=5e-4), \
        float(jnp.max(jnp.abs(out - ref)))

    print("KERNEL_OK")
</pallas_src>

<mosaic_0001>
module attributes {stable_mosaic.version = 11 : i64} {
  func.func @florr_kernel(%arg0: i32, %arg1: memref<8x128xbf16, #tpu.memory_space<vmem>>, %arg2: memref<128x128xbf16, #tpu.memory_space<vmem>>, %arg3: memref<1x128xf32, #tpu.memory_space<vmem>>, %arg4: memref<128x64xbf16, #tpu.memory_space<vmem>>, %arg5: memref<1x64xf32, #tpu.memory_space<vmem>>, %arg6: memref<64x128xbf16, #tpu.memory_space<vmem>>, %arg7: memref<1x128xf32, #tpu.memory_space<vmem>>, %arg8: memref<8x128xf32, #tpu.memory_space<vmem>>) attributes {dimension_semantics = [#tpu.dimension_semantics<parallel>], iteration_bounds = array<i64: 1>, scalar_prefetch = 0 : i64, scratch_operands = 0 : i64, tpu.core_type = #tpu.core_type<tc>, window_params = [{transform_indices = @transform_0, window_bounds = array<i64: 8, 128>}, {pipeline_mode = #tpu.pipeline_mode<synchronous>, transform_indices = @transform_1, window_bounds = array<i64: 128, 128>}, {pipeline_mode = #tpu.pipeline_mode<synchronous>, transform_indices = @transform_2, window_bounds = array<i64: 1, 128>}, {pipeline_mode = #tpu.pipeline_mode<synchronous>, transform_indices = @transform_3, window_bounds = array<i64: 128, 64>}, {pipeline_mode = #tpu.pipeline_mode<synchronous>, transform_indices = @transform_4, window_bounds = array<i64: 1, 64>}, {pipeline_mode = #tpu.pipeline_mode<synchronous>, transform_indices = @transform_5, window_bounds = array<i64: 64, 128>}, {pipeline_mode = #tpu.pipeline_mode<synchronous>, transform_indices = @transform_6, window_bounds = array<i64: 1, 128>}, {transform_indices = @transform_7, window_bounds = array<i64: 8, 128>}]} {
    %c0 = arith.constant 0 : index
    %c0_0 = arith.constant 0 : index
    %0 = vector.load %arg1[%c0, %c0_0] : memref<8x128xbf16, #tpu.memory_space<vmem>>, vector<8x128xbf16>
    %c0_1 = arith.constant 0 : index
    %c0_2 = arith.constant 0 : index
    %1 = vector.load %arg3[%c0_1, %c0_2] : memref<1x128xf32, #tpu.memory_space<vmem>>, vector<1x128xf32>
    %c0_3 = arith.constant 0 : index
    %c0_4 = arith.constant 0 : index
    %2 = vector.load %arg5[%c0_3, %c0_4] : memref<1x64xf32, #tpu.memory_space<vmem>>, vector<1x64xf32>
    %c0_5 = arith.constant 0 : index
    %c0_6 = arith.constant 0 : index
    %3 = vector.load %arg7[%c0_5, %c0_6] : memref<1x128xf32, #tpu.memory_space<vmem>>, vector<1x128xf32>
    %c0_7 = arith.constant 0 : index
    %c0_8 = arith.constant 0 : index
    %4 = vector.load %arg2[%c0_7, %c0_8] : memref<128x128xbf16, #tpu.memory_space<vmem>>, vector<128x128xbf16>
    %cst = arith.constant dense<0.000000e+00> : vector<8x128xf32>
    %5 = tpu.matmul %0, %4, %cst {dimension_numbers = #tpu.dot_dimension_numbers<[1], [0], [0], [1], [0, 0, 1, 1], [], []>} : vector<8x128xbf16>, vector<128x128xbf16>, vector<8x128xf32> -> vector<8x128xf32>
    %6 = vector.broadcast %1 : vector<1x128xf32> to vector<8x128xf32>
    %7 = arith.addf %5, %6 : vector<8x128xf32>
    %cst_9 = arith.constant 0.000000e+00 : f32
    %8 = vector.broadcast %cst_9 : f32 to vector<8x128xf32>
    %9 = arith.maximumf %7, %8 : vector<8x128xf32>
    %10 = arith.truncf %9 : vector<8x128xf32> to vector<8x128xbf16>
    %c0_10 = arith.constant 0 : index
    %c0_11 = arith.constant 0 : index
    %11 = vector.load %arg4[%c0_10, %c0_11] : memref<128x64xbf16, #tpu.memory_space<vmem>>, vector<128x64xbf16>
    %cst_12 = arith.constant dense<0.000000e+00> : vector<8x64xf32>
    %12 = tpu.matmul %10, %11, %cst_12 {dimension_numbers = #tpu.dot_dimension_numbers<[1], [0], [0], [1], [0, 0, 1, 1], [], []>} : vector<8x128xbf16>, vector<128x64xbf16>, vector<8x64xf32> -> vector<8x64xf32>
    %13 = vector.broadcast %2 : vector<1x64xf32> to vector<8x64xf32>
    %14 = arith.addf %12, %13 : vector<8x64xf32>
    %cst_13 = arith.constant 0.000000e+00 : f32
    %15 = vector.broadcast %cst_13 : f32 to vector<8x64xf32>
    %16 = arith.maximumf %14, %15 : vector<8x64xf32>
    %17 = arith.truncf %16 : vector<8x64xf32> to vector<8x64xbf16>
    %c0_14 = arith.constant 0 : index
    %c0_15 = arith.constant 0 : index
    %18 = vector.load %arg6[%c0_14, %c0_15] : memref<64x128xbf16, #tpu.memory_space<vmem>>, vector<64x128xbf16>
    %cst_16 = arith.constant dense<0.000000e+00> : vector<8x128xf32>
    %19 = tpu.matmul %17, %18, %cst_16 {dimension_numbers = #tpu.dot_dimension_numbers<[1], [0], [0], [1], [0, 0, 1, 1], [], []>} : vector<8x64xbf16>, vector<64x128xbf16>, vector<8x128xf32> -> vector<8x128xf32>
    %20 = vector.broadcast %3 : vector<1x128xf32> to vector<8x128xf32>
    %21 = arith.addf %19, %20 : vector<8x128xf32>
    %22 = tpu.iota {dimensions = array<i32: 1>} : vector<8x128xi32>
    %c2_i32 = arith.constant 2 : i32
    %23 = vector.broadcast %c2_i32 : i32 to vector<8x128xi32>
    %24 = arith.cmpi slt, %22, %23 : vector<8x128xi32>
    %cst_17 = arith.constant 5.000000e-01 : f32
    %25 = vector.broadcast %cst_17 : f32 to vector<8x128xf32>
    %26 = arith.mulf %25, %21 : vector<8x128xf32>
    %27 = arith.select %24, %21, %26 : vector<8x128xi1>, vector<8x128xf32>
    %28 = math.tanh %27 : vector<8x128xf32>
    %cst_18 = arith.constant 1.000000e+00 : f32
    %29 = vector.broadcast %cst_18 : f32 to vector<8x128xf32>
    %30 = arith.addf %28, %29 : vector<8x128xf32>
    %cst_19 = arith.constant 5.000000e-01 : f32
    %31 = vector.broadcast %cst_19 : f32 to vector<8x128xf32>
    %32 = arith.mulf %31, %30 : vector<8x128xf32>
    %33 = arith.select %24, %28, %32 : vector<8x128xi1>, vector<8x128xf32>
    %c0_20 = arith.constant 0 : index
    %c0_21 = arith.constant 0 : index
    %34 = vector.load %arg8[%c0_20, %c0_21] : memref<8x128xf32, #tpu.memory_space<vmem>>, vector<8x128xf32>
    tpu.vector_store %arg8[%c0_20, %c0_21], %33 {strides = array<i32>} : memref<8x128xf32, #tpu.memory_space<vmem>>, vector<8x128xf32>,
    return
  }
  func.func @transform_0(%arg0: i32) -> (i32, i32) {
    %c0_i32 = arith.constant 0 : i32
    %c0_i32_0 = arith.constant 0 : i32
    return %arg0, %c0_i32 : i32, i32
  }
  func.func @transform_1(%arg0: i32) -> (i32, i32) {
    %c0_i32 = arith.constant 0 : i32
    %c0_i32_0 = arith.constant 0 : i32
    %c0_i32_1 = arith.constant 0 : i32
    return %c0_i32, %c0_i32_0 : i32, i32
  }
  func.func @transform_2(%arg0: i32) -> (i32, i32) {
    %c0_i32 = arith.constant 0 : i32
    %c0_i32_0 = arith.constant 0 : i32
    %c0_i32_1 = arith.constant 0 : i32
    return %c0_i32, %c0_i32_0 : i32, i32
  }
  func.func @transform_3(%arg0: i32) -> (i32, i32) {
    %c0_i32 = arith.constant 0 : i32
    %c0_i32_0 = arith.constant 0 : i32
    %c0_i32_1 = arith.constant 0 : i32
    return %c0_i32, %c0_i32_0 : i32, i32
  }
  func.func @transform_4(%arg0: i32) -> (i32, i32) {
    %c0_i32 = arith.constant 0 : i32
    %c0_i32_0 = arith.constant 0 : i32
    %c0_i32_1 = arith.constant 0 : i32
    return %c0_i32, %c0_i32_0 : i32, i32
  }
  func.func @transform_5(%arg0: i32) -> (i32, i32) {
    %c0_i32 = arith.constant 0 : i32
    %c0_i32_0 = arith.constant 0 : i32
    %c0_i32_1 = arith.constant 0 : i32
    return %c0_i32, %c0_i32_0 : i32, i32
  }
  func.func @transform_6(%arg0: i32) -> (i32, i32) {
    %c0_i32 = arith.constant 0 : i32
    %c0_i32_0 = arith.constant 0 : i32
    %c0_i32_1 = arith.constant 0 : i32
    return %c0_i32, %c0_i32_0 : i32, i32
  }
  func.func @transform_7(%arg0: i32) -> (i32, i32) {
    %c0_i32 = arith.constant 0 : i32
    %c0_i32_0 = arith.constant 0 : i32
    return %arg0, %c0_i32 : i32, i32
  }
}

</mosaic_0001>

<bundles_post_ra>
// kernel: tpu_custom_call.1
= control target key start
LH: loop header
LB: loop body
LE: loop exit
PB: predicated region body
PF: predicated region fallthrough
CT: control target
= control target key end

     0   :  { %12 = vsyncpa [#allocation3], 0  ;;  %s711_s0 = inlined_call_operand.hbm [shape: bf16[8,128], index: 0, kind: input, shape index: {}]   ;;  %s712_s1 = inlined_call_operand.vmem [shape: bf16[128,128], index: 1, kind: input, shape index: {}]   ;;  %s713_s2 = inlined_call_operand.vmem [shape: f32[1,128], index: 2, kind: input, shape index: {}]   ;;  %s714_s3 = inlined_call_operand.vmem [shape: bf16[128,64], index: 3, kind: input, shape index: {}]   ;;  %s715_s4 = inlined_call_operand.vmem [shape: f32[1,64], index: 4, kind: input, shape index: {}]   ;;  %s716_s5 = inlined_call_operand.vmem [shape: bf16[64,128], index: 5, kind: input, shape index: {}]   ;;  %s717_s6 = inlined_call_operand.vmem [shape: f32[1,128], index: 6, kind: input, shape index: {}]   ;;  %s718_s7 = inlined_call_operand.hbm [shape: f32[8,128], index: 7, kind: output, shape index: {}]  }
   0x1   :  { %13 = vsyncpa [#allocation4], 0  ;;  %s548_s24 = smov [#allocation2]   ;;  %s500_s28 = scalar_lea.hbm %s711_s0, 64 }
   0x2   :  { %s20_s25 = sshll.u32 %s548_s24, 4  ;;  %p501_p0 = scmp.ne.s32.totalorder %s711_s0, %s500_s28  ;;  %s21_s25 = int_to_ptr.vmem [resolvable:$true] %s20_s25 }
   0x3   :  { %p504_p1 = scmp.lt.u32.totalorder %s500_s28, %s711_s0 }
   0x5   :  { %p506_p2 = pnand %p504_p1, %p501_p0 }
   0x7   :  { %509 = shalt.err (!%p506_p2)
}
   0x8   :  { %s510_s10 = scalar_lea.vmem %s21_s25, 64  ;;  %p515_p4 = scmp.lt.s32.totalorder %s21_s25, %s21_s25 }
   0x9   :  { %p511_p3 = scmp.ne.s32.totalorder %s21_s25, %s510_s10  ;;  %p516_p5 = scmp.lt.s32.totalorder %s510_s10, %s510_s10 }
   0xb   :  { %p517_p6 = por %p516_p5, %p515_p4 }
   0xd   :  { %p518_p7 = pnand %p517_p6, %p511_p3 }
   0xf   :  { %521 = shalt.err (!%p518_p7)
}
  0x10   :  { %23 = dma.hbm_to_vmem [thread:$0]  %s711_s0, 64, %s21_s25, [#allocation3]  }
  0x11   :  { %544 = dma.done.wait [#allocation3], 64  }
  0x12   :  { %545 = vsyncadd [#allocation3], 4294967232  ;;  %v549_v0 = vmov 0.0   ;;  %vm550_vm0 = vmmov 0   ;;  %v478_v1 = vld [vmem:[%s712_s1] sm:$0xff]   ;;  %v479_v2 = vld [vmem:[%s712_s1 + $0x8] sm:$0xff]   ;;  %v350_v38 = vlaneseq }
  0x13   :  { %422 = vmatprep.subr.bf16.mxu0 %v549_v0  ;;  %438 = vmatprep.mubr.msk.bf16.mxu0 %vm550_vm0, %v549_v0  ;;  %v480_v3 = vld [vmem:[%s712_s1 + $0x10] sm:$0xff]   ;;  %v486_v4 = vld [vmem:[%s714_s3] sm:$0xff]   ;;  %v481_v5 = vld [vmem:[%s712_s1 + $0x18] sm:$0xff]   ;;  %vm306_vm1 = vcmask 523264  }
  0x14   :  { %442 = vmatprep.subr.bf16.mxu1 %v549_v0  ;;  %458 = vmatprep.mubr.msk.bf16.mxu1 %vm550_vm0, %v549_v0  ;;  %v487_v6 = vld [vmem:[%s714_s3 + $0x8] sm:$0xff]   ;;  %v482_v7 = vld [vmem:[%s712_s1 + $0x20] sm:$0xff]   ;;  %v488_v8 = vld [vmem:[%s714_s3 + $0x10] sm:$0xff]   ;;  %v351_v40 = vand.u32 127, %v350_v38 }
  0x15   :  { %423 = vmatpush3.bf16.msra.mxu0 %v478_v1  ;;  %443 = vmatpush3.bf16.msra.mxu1 %v486_v4  ;;  %v483_v9 = vld [vmem:[%s712_s1 + $0x28] sm:$0xff]   ;;  %v489_v10 = vld [vmem:[%s714_s3 + $0x18] sm:$0xff]   ;;  %v484_v11 = vld [vmem:[%s712_s1 + $0x30] sm:$0xff]  }
  0x16   :  { %424 = vmatprep.subr.bf16.mxu0 %v549_v0  ;;  %444 = vmatprep.subr.bf16.mxu1 %v549_v0  ;;  %v490_v12 = vld [vmem:[%s714_s3 + $0x20] sm:$0xff]   ;;  %v485_v13 = vld [vmem:[%s712_s1 + $0x38] sm:$0xff]   ;;  %v491_v14 = vld [vmem:[%s714_s3 + $0x28] sm:$0xff]   ;;  %vm352_vm2 = vcmp.lt.s32.totalorder %v351_v40, 2 }
  0x17   :  { %v40_v15 = vld [vmem:[#allocation2] sm:$0xf]  ;;  %v492_v16 = vld [vmem:[%s714_s3 + $0x30] sm:$0xff]   ;;  %v493_v17 = vld [vmem:[%s714_s3 + $0x38] sm:$0xff]  }
  0x18   :  { %v494_v18 = vld [vmem:[%s716_s5] sm:$0xff]   ;;  %v495_v19 = vld [vmem:[%s716_s5 + $0x8] sm:$0xff]   ;;  %v496_v28 = vld [vmem:[%s716_s5 + $0x10] sm:$0xff]  }
  0x19   :  { %425 = vmatpush3.bf16.msra.mxu0 %v479_v2  ;;  %445 = vmatpush3.bf16.msra.mxu1 %v487_v6  ;;  %v375_v20 = vld [vmem:[%s713_s2] ss:$0 sm:$0xff]  ;;  %v497_v29 = vld [vmem:[%s716_s5 + $0x18] sm:$0xff]  }
  0x1a   :  { %426 = vmatprep.subr.bf16.mxu0 %v549_v0  ;;  %446 = vmatprep.subr.bf16.mxu1 %v549_v0  ;;  %v384_v30 = vld [vmem:[%s715_s4] ss:$0 sm:$0xff]  ;;  %s551_s4 = smov [#allocation5]  }
  0x1b   :  { %v393_v39 = vld [vmem:[%s717_s6] ss:$0 sm:$0xff]  ;;  %s366_s5 = sshll.u32 %s551_s4, 4  ;;  %s367_s5 = int_to_ptr.vmem [resolvable:$true] %s366_s5 }
  0x1c   :  { %s522_s8 = scalar_lea.vmem %s367_s5, 128  ;;  %p527_p9 = scmp.lt.s32.totalorder %s367_s5, %s367_s5 }
  0x1d   :  { %427 = vmatpush3.bf16.msra.mxu0 %v480_v3  ;;  %447 = vmatpush3.bf16.msra.mxu1 %v488_v8  ;;  %p523_p8 = scmp.ne.s32.totalorder %s367_s5, %s522_s8  ;;  %p528_p10 = scmp.lt.s32.totalorder %s522_s8, %s522_s8 }
  0x1e   :  { %428 = vmatprep.subr.bf16.mxu0 %v549_v0  ;;  %448 = vmatprep.subr.bf16.mxu1 %v549_v0 }
  0x1f   :  { %p529_p11 = por %p528_p10, %p527_p9 }
  0x21   :  { %429 = vmatpush3.bf16.msra.mxu0 %v481_v5  ;;  %449 = vmatpush3.bf16.msra.mxu1 %v489_v10  ;;  %p530_p12 = pnand %p529_p11, %p523_p8 }
  0x22   :  { %430 = vmatprep.subr.bf16.mxu0 %v549_v0  ;;  %450 = vmatprep.subr.bf16.mxu1 %v549_v0 }
  0x25   :  { %431 = vmatpush3.bf16.msra.mxu0 %v482_v7  ;;  %451 = vmatpush3.bf16.msra.mxu1 %v490_v12 }
  0x26   :  { %432 = vmatprep.subr.bf16.mxu0 %v549_v0  ;;  %452 = vmatprep.subr.bf16.mxu1 %v549_v0 }
  0x29   :  { %433 = vmatpush3.bf16.msra.mxu0 %v483_v9  ;;  %453 = vmatpush3.bf16.msra.mxu1 %v491_v14 }
  0x2a   :  { %434 = vmatprep.subr.bf16.mxu0 %v549_v0  ;;  %454 = vmatprep.subr.bf16.mxu1 %v549_v0 }
  0x2d   :  { %435 = vmatpush3.bf16.msra.mxu0 %v484_v11  ;;  %455 = vmatpush3.bf16.msra.mxu1 %v492_v16 }
  0x2e   :  { %436 = vmatprep.subr.bf16.mxu0 %v549_v0  ;;  %456 = vmatprep.subr.bf16.mxu1 %v549_v0 }
  0x31   :  { %437 = vmatpush3.bf16.msra.mxu0 %v485_v13  ;;  %457 = vmatpush3.bf16.msra.mxu1 %v493_v17 }
  0x32   :  { %462 = vmatprep.subr.bf16.mxu0 %v549_v0 }
  0x34   :  { %439 = vmatmul.mubr.bf16.vlgmr.msra.gmra.mrb[0].mxu0 %v40_v15 }
  0x35   :  { %470 = vmatprep.mubr.msk.bf16.mxu0 %vm550_vm0, %v549_v0  ;;  %463 = vmatpush3.bf16.msra.mxu0 %v494_v18 }
  0x36   :  { %464 = vmatprep.subr.bf16.mxu0 %v549_v0 }
  0x39   :  { %465 = vmatpush3.bf16.msra.mxu0 %v495_v19 }
  0x3a   :  { %466 = vmatprep.subr.bf16.mxu0 %v549_v0 }
  0x3d   :  { %467 = vmatpush3.bf16.msra.mxu0 %v496_v28 }
  0x3e   :  { %468 = vmatprep.subr.bf16.mxu0 %v549_v0 }
  0x41   :  { %469 = vmatpush3.bf16.msra.mxu0 %v497_v29 }
 0x107   :  { %v148_v21 = vpop.f32.mrb[0].mxu0 }
 0x108   :  { %v149_v22 = vadd.f32 %v375_v20, %v148_v21  ;;  %v440_v23 = vpop.f32.mrb[1].mxu0 }
 0x109   :  { %v151_v24 = vpop.f32.mrb[2].mxu0 }
 0x10a   :  { %v154_v25 = vmax.f32 %v149_v22, 0.0  ;;  %v441_v26 = vpop.f32.mrb[3].mxu0 }
 0x10c   :  { %v155_v27 = vpack.c.bf16 %v154_v25, %v154_v25 }
 0x10e   :  { %459 = vmatmul.mubr.bf16.vlgmr.msra.gmra.mrb[0].mxu1 %v155_v27 }
 0x1e1   :  { %v260_v31 = vpop.f32.mrb[0].mxu1 }
 0x1e2   :  { %v261_v32 = vadd.f32 %v384_v30, %v260_v31  ;;  %v460_v33 = vpop.f32.mrb[1].mxu1 }
 0x1e3   :  { %v263_v34 = vpop.f32.mrb[2].mxu1 }
 0x1e4   :  { %v266_v35 = vmax.f32 %v261_v32, 0.0  ;;  %v461_v36 = vpop.f32.mrb[3].mxu1 }
 0x1e6   :  { %v267_v37 = vpack.c.bf16 %v266_v35, %v266_v35 }
 0x1e8   :  { %471 = vmatmul.mubr.msk.bf16.vlgmr.msra.gmra.mrb[4].mxu0 %vm306_vm1, %v267_v37 }
 0x2bb   :  { %v344_v41 = vpop.f32.mrb[4].mxu0 }
 0x2bc   :  { %v345_v42 = vadd.f32 %v393_v39, %v344_v41  ;;  %v472_v43 = vpop.f32.mrb[5].mxu0 }
 0x2bd   :  { %v347_v44 = vpop.f32.mrb[6].mxu0 }
 0x2be   :  { %v353_v45 = vmul.f32 0.5, %v345_v42  ;;  %v473_v46 = vpop.f32.mrb[7].mxu0 }
 0x2c0   :  { %v354_v47 = vsel %vm352_vm2, %v345_v42, %v353_v45 }
 0x2c1   :  { %498 = vtanh.f32 %v354_v47 }
 0x2cb   :  { %v499_v48 = vpop.eup %498 }
 0x2cc   :  { %v356_v49 = vadd.f32 1.0, %v499_v48 }
 0x2ce   :  { %v357_v50 = vmul.f32 0.5, %v356_v49 }
 0x2d0   :  { %v358_v51 = vsel %vm352_vm2, %v499_v48, %v357_v50 }
 0x2d1   :  { %359 = vst [vmem:[#allocation5] sm:$0xff] %v358_v51 }
 0x2d2   :  { %533 = shalt.err (!%p530_p12)
}
 0x2d3   :  { %s534_s10 = scalar_lea.hbm %s718_s7, 128 }
 0x2d4   :  { %p535_p13 = scmp.ne.s32.totalorder %s718_s7, %s534_s10  ;;  %p538_p0 = scmp.lt.u32.totalorder %s534_s10, %s718_s7 }
 0x2d6   :  { %p540_p1 = pnand %p538_p0, %p535_p13 }
 0x2d8   :  { %543 = shalt.err (!%p540_p1)
}
 0x2d9   :  { %369 = dma.vmem_to_hbm [thread:$0]  %s367_s5, 128, %s718_s7, [#allocation4]  }
 0x2da   :  { %546 = dma.done.wait [#allocation4], 128  }
 0x2db   :  { %547 = vsyncadd [#allocation4], 4294967168 }
 0x2dc   :  { %373 = vsyncpa [#allocation3], 1 }
 0x2dd   :  { %374 = vsyncpa [#allocation4], 1 }

</bundles_post_ra>
